<compile_context>
chip_gen: v7x
topology: tpu7x:2x2x1
jax: 0.10.0
libtpu: 0.0.40
codegen_flags: <defaults>
</compile_context>

<pallas_src>
import functools

import jax
import jax.numpy as jnp
import numpy as np
from jax import lax
from jax.experimental import pallas as pl
from jax.experimental.pallas import tpu as pltpu

# ---------------- model hyperparameters (synthetic DNA_VQVAE) ----------------
IN_CH = 4          # A, C, G, T
HIDDEN = 32
EMBED_DIM = 16
NUM_CODES = 64
KSIZE = 4
STRIDE = 2
PAD = 1


# ------------------------------ fused kernel ----------------------------------
def _fused_encoder_kernel(p1_ref, w1_ref, b1_ref, w2_ref, b2_ref, cb_ref, esq_ref,
                          o_ref, *, t2):
    """One (batch, seq-tile) step: conv1+ReLU -> conv2 -> VQ argmin, all in VMEM.

    p1_ref : (R, IN_CH*KSIZE) conv1 im2col patches, R = 2*t2 + 2 (1 halo row each
             side), rows ordered phase-split: [local-even rows E | local-odd rows O].
    o_ref  : (1, t2) int32 codebook indices (lane-dense).
    """
    R = 2 * t2 + 2
    m = pl.program_id(1)

    # conv1 + bias + ReLU (MXU matmul on the patch rows).
    h1 = jnp.dot(p1_ref[...], w1_ref[...], preferred_element_type=jnp.float32)
    h1 = jnp.maximum(h1 + b1_ref[...], 0.0)                      # (R, HIDDEN)

    # conv2 zero-padding: halo rows that fall outside [0, L1) must be exactly 0
    # (not relu(b1)).  That only happens for row 0 of the first tile and row R-1
    # of the last tile.
    rho = lax.broadcasted_iota(jnp.int32, h1.shape, 0)
    first = m == 0
    last = m == pl.num_programs(1) - 1
    bad = (first & (rho == 0)) | (last & (rho == R - 1))
    h1 = jnp.where(bad, 0.0, h1)

    # In-VMEM im2col for conv2 (k=4, stride=2).  With the phase-split row order,
    # each tap is a contiguous slice:
    #   rows [0 .. t2]      = E[m'] = h1[2*J0 - 1 + 2*m']   (taps 0 and 2)
    #   rows [t2+1 .. R-1]  = O[m'] = h1[2*J0     + 2*m']   (taps 1 and 3)
    E = h1[0:t2 + 1]
    O = h1[t2 + 1:R]
    p2 = jnp.concatenate([E[0:t2], O[0:t2], E[1:t2 + 1], O[1:t2 + 1]], axis=1)

    # conv2 (no activation before quantization).
    z = jnp.dot(p2, w2_ref[...], preferred_element_type=jnp.float32) + b2_ref[...]

    # Nearest-codebook index.  ||z||^2 is constant over k so it is dropped.
    # Put the codebook axis on sublanes so the argmin result is a lane row (1, t2).
    dots = lax.dot_general(cb_ref[...], z, (((1,), (1,)), ((), ())),
                           preferred_element_type=jnp.float32)    # (K, t2)
    dist = esq_ref[...] - 2.0 * dots                              # (K, t2)
    k_iota = lax.broadcasted_iota(jnp.int32, dist.shape, 0)
    min_d = jnp.min(dist, axis=0, keepdims=True)
    # first-occurrence tie-break (matches torch.argmin / jnp.argmin)
    idx = jnp.min(jnp.where(dist == min_d, k_iota, NUM_CODES), axis=0, keepdims=True)
    o_ref[...] = idx.astype(jnp.int32)                            # (1, t2)


# ------------------------------ JAX wrapper ------------------------------------
def _pick_tile(l2, cap=512):
    """Largest divisor of l2 that is <= cap (keeps per-tile VMEM bounded)."""
    t = min(l2, cap)
    while l2 % t:
        t -= 1
    return t


def get_codebook_indices(params, x):
    """DNA_VQVAEEncoder.forward: x:(B,4,L) float32 -> indices (B, L//4) int32."""
    B, C, L = x.shape
    assert C == IN_CH and L % 4 == 0
    L1, L2 = L // 2, L // 4
    T2 = _pick_tile(L2)            # conv2 output positions per grid step
    n_tiles = L2 // T2
    R = 2 * T2 + 2                 # conv1 positions per tile (with 1 halo each side)

    # ---- conv1 im2col in the wrapper (input path is tiny: 4 channels) ----------
    # Rows are halo'd and phase-split-reordered so the kernel's conv2 im2col only
    # needs contiguous slices.  Row ordering per tile m (J0 = m*T2):
    #   rho <= T2 : E rows, conv1 position g = 2*J0 - 1 + 2*rho
    #   rho >  T2 : O rows, conv1 position g = 2*J0 + 2*(rho - (T2+1))
    x_big = jnp.pad(x, ((0, 0), (0, 0), (3, 3)))
    rho = jnp.arange(R)
    g_local = jnp.where(rho <= T2, 2 * rho - 1, 2 * (rho - (T2 + 1)))
    g = 2 * T2 * jnp.arange(n_tiles)[:, None] + g_local[None, :]        # (n_tiles, R)
    cols = (2 * g + 2)[..., None] + jnp.arange(KSIZE)                   # (n_tiles, R, k)
    patches = x_big[:, :, cols]                                         # (B, C, n_tiles, R, k)
    p1 = jnp.transpose(patches, (0, 2, 3, 1, 4)).reshape(B, n_tiles, R, C * KSIZE)

    # ---- parameters flattened into matmul layouts (stay VMEM-resident) ---------
    w1m = params["w1"].reshape(HIDDEN, C * KSIZE).T                      # (C*k, H), col = c*k+t
    b1 = params["b1"].reshape(1, HIDDEN)
    w2m = jnp.transpose(params["w2"], (2, 1, 0)).reshape(KSIZE * HIDDEN, EMBED_DIM)  # row = t*H+c
    b2 = params["b2"].reshape(1, EMBED_DIM)
    cb = params["codebook"]                                              # (K, D)
    e_sq = jnp.sum(cb * cb, axis=-1, keepdims=True)                      # (K, 1), hoisted

    kern = functools.partial(_fused_encoder_kernel, t2=T2)
    flops = 2 * B * n_tiles * (R * C * KSIZE * HIDDEN
                               + T2 * KSIZE * HIDDEN * EMBED_DIM
                               + T2 * EMBED_DIM * NUM_CODES)
    bytes_accessed = 4 * (p1.size + w1m.size + b1.size + w2m.size + b2.size
                          + cb.size + e_sq.size + B * L2)

    out = pl.pallas_call(
        kern,
        out_shape=jax.ShapeDtypeStruct((B, n_tiles, 1, T2), jnp.int32),
        grid=(B, n_tiles),
        in_specs=[
            pl.BlockSpec((None, None, R, C * KSIZE), lambda b, m: (b, m, 0, 0)),
            pl.BlockSpec((C * KSIZE, HIDDEN), lambda b, m: (0, 0)),
            pl.BlockSpec((1, HIDDEN), lambda b, m: (0, 0)),
            pl.BlockSpec((KSIZE * HIDDEN, EMBED_DIM), lambda b, m: (0, 0)),
            pl.BlockSpec((1, EMBED_DIM), lambda b, m: (0, 0)),
            pl.BlockSpec((NUM_CODES, EMBED_DIM), lambda b, m: (0, 0)),
            pl.BlockSpec((NUM_CODES, 1), lambda b, m: (0, 0)),
        ],
        out_specs=pl.BlockSpec((None, None, 1, T2), lambda b, m: (b, m, 0, 0)),
        compiler_params=pltpu.CompilerParams(
            dimension_semantics=("parallel", "parallel")),
        cost_estimate=pl.CostEstimate(flops=flops, transcendentals=0,
                                      bytes_accessed=bytes_accessed),
    )(p1, w1m, b1, w2m, b2, cb, e_sq)

    return out.reshape(B, L2)


# ------------------------------ params / reference -----------------------------
def init_params(key):
    k1, k2, k3, k4, k5 = jax.random.split(key, 5)
    return dict(
        w1=jax.random.normal(k1, (HIDDEN, IN_CH, KSIZE), jnp.float32) * 0.2,
        b1=jax.random.normal(k2, (HIDDEN,), jnp.float32) * 0.1,
        w2=jax.random.normal(k3, (EMBED_DIM, HIDDEN, KSIZE), jnp.float32) * 0.1,
        b2=jax.random.normal(k4, (EMBED_DIM,), jnp.float32) * 0.1,
        codebook=jax.random.normal(k5, (NUM_CODES, EMBED_DIM), jnp.float32),
    )


def reference_indices(params, x):
    dn1 = jax.lax.conv_dimension_numbers(x.shape, params["w1"].shape, ("NCH", "OIH", "NCH"))
    h = jax.lax.conv_general_dilated(x, params["w1"], (STRIDE,), ((PAD, PAD),),
                                     dimension_numbers=dn1)
    h = jnp.maximum(h + params["b1"][None, :, None], 0.0)
    dn2 = jax.lax.conv_dimension_numbers(h.shape, params["w2"].shape, ("NCH", "OIH", "NCH"))
    z = jax.lax.conv_general_dilated(h, params["w2"], (STRIDE,), ((PAD, PAD),),
                                     dimension_numbers=dn2)
    z = z + params["b2"][None, :, None]
    z = jnp.transpose(z, (0, 2, 1))                                  # (B, L2, D)
    cb = params["codebook"]
    dist = (jnp.sum(z * z, -1, keepdims=True)
            - 2.0 * jnp.einsum("bld,kd->blk", z, cb)
            + jnp.sum(cb * cb, -1)[None, None, :])
    return jnp.argmin(dist, axis=-1).astype(jnp.int32)


# ---------------------------------- main ----------------------------------------
if __name__ == "__main__":
    key = jax.random.PRNGKey(0)
    pkey, xkey = jax.random.split(key)
    params = init_params(pkey)

    B, L = 2, 16
    # one-hot DNA sequences: (B, 4, L) float32 (PyTorch NCL layout)
    bases = jax.random.randint(xkey, (B, L), 0, IN_CH)
    x = jnp.transpose(jax.nn.one_hot(bases, IN_CH, dtype=jnp.float32), (0, 2, 1))

    out = jax.block_until_ready(get_codebook_indices(params, x))
    ref = jax.block_until_ready(reference_indices(params, x))

    assert out.shape == (B, L // 4) and out.dtype == jnp.int32
    assert np.array_equal(np.asarray(out), np.asarray(ref)), (out, ref)

    print("KERNEL_OK")
</pallas_src>

<mosaic_0001>
module attributes {stable_mosaic.version = 11 : i64} {
  func.func @_fused_encoder_kernel(%arg0: i32, %arg1: i32, %arg2: memref<1x1x10x16xf32, #tpu.memory_space<vmem>>, %arg3: memref<16x32xf32, #tpu.memory_space<vmem>>, %arg4: memref<1x32xf32, #tpu.memory_space<vmem>>, %arg5: memref<128x16xf32, #tpu.memory_space<vmem>>, %arg6: memref<1x16xf32, #tpu.memory_space<vmem>>, %arg7: memref<64x16xf32, #tpu.memory_space<vmem>>, %arg8: memref<64x1xf32, #tpu.memory_space<vmem>>, %arg9: memref<1x1x1x4xi32, #tpu.memory_space<vmem>>) attributes {dimension_semantics = [#tpu.dimension_semantics<parallel>, #tpu.dimension_semantics<parallel>], iteration_bounds = array<i64: 2, 1>, scalar_prefetch = 0 : i64, scratch_operands = 0 : i64, tpu.core_type = #tpu.core_type<tc>, window_params = [{transform_indices = @transform_0, window_bounds = array<i64: 1, 1, 10, 16>}, {pipeline_mode = #tpu.pipeline_mode<synchronous>, transform_indices = @transform_1, window_bounds = array<i64: 16, 32>}, {pipeline_mode = #tpu.pipeline_mode<synchronous>, transform_indices = @transform_2, window_bounds = array<i64: 1, 32>}, {pipeline_mode = #tpu.pipeline_mode<synchronous>, transform_indices = @transform_3, window_bounds = array<i64: 128, 16>}, {pipeline_mode = #tpu.pipeline_mode<synchronous>, transform_indices = @transform_4, window_bounds = array<i64: 1, 16>}, {pipeline_mode = #tpu.pipeline_mode<synchronous>, transform_indices = @transform_5, window_bounds = array<i64: 64, 16>}, {pipeline_mode = #tpu.pipeline_mode<synchronous>, transform_indices = @transform_6, window_bounds = array<i64: 64, 1>}, {transform_indices = @transform_7, window_bounds = array<i64: 1, 1, 1, 4>}]} {
    %c0 = arith.constant 0 : index
    %c0_0 = arith.constant 0 : index
    %c0_1 = arith.constant 0 : index
    %c0_2 = arith.constant 0 : index
    %0 = vector.load %arg2[%c0, %c0_0, %c0_1, %c0_2] : memref<1x1x10x16xf32, #tpu.memory_space<vmem>>, vector<1x1x10x16xf32>
    %1 = vector.shape_cast %0 : vector<1x1x10x16xf32> to vector<10x16xf32>
    %c0_3 = arith.constant 0 : index
    %c0_4 = arith.constant 0 : index
    %2 = vector.load %arg3[%c0_3, %c0_4] : memref<16x32xf32, #tpu.memory_space<vmem>>, vector<16x32xf32>
    %cst = arith.constant dense<0.000000e+00> : vector<10x32xf32>
    %3 = tpu.matmul %1, %2, %cst {dimension_numbers = #tpu.dot_dimension_numbers<[1], [0], [0], [1], [0, 0, 1, 1], [], []>} : vector<10x16xf32>, vector<16x32xf32>, vector<10x32xf32> -> vector<10x32xf32>
    %c0_5 = arith.constant 0 : index
    %c0_6 = arith.constant 0 : index
    %4 = vector.load %arg4[%c0_5, %c0_6] : memref<1x32xf32, #tpu.memory_space<vmem>>, vector<1x32xf32>
    %5 = vector.broadcast %4 : vector<1x32xf32> to vector<10x32xf32>
    %6 = arith.addf %3, %5 : vector<10x32xf32>
    %cst_7 = arith.constant 0.000000e+00 : f32
    %7 = vector.broadcast %cst_7 : f32 to vector<10x32xf32>
    %8 = arith.maximumf %6, %7 : vector<10x32xf32>
    %9 = tpu.iota {dimensions = array<i32: 0>} : vector<10x32xi32>
    %c0_i32 = arith.constant 0 : i32
    %10 = arith.cmpi eq, %arg1, %c0_i32 : i32
    %c0_i32_8 = arith.constant 0 : i32
    %11 = arith.cmpi eq, %arg1, %c0_i32_8 : i32
    %c0_i32_9 = arith.constant 0 : i32
    %12 = vector.broadcast %c0_i32_9 : i32 to vector<10x32xi32>
    %13 = arith.cmpi eq, %9, %12 : vector<10x32xi32>
    %14 = vector.broadcast %10 : i1 to vector<10x32xi1>
    %15 = arith.andi %14, %13 : vector<10x32xi1>
    %c9_i32 = arith.constant 9 : i32
    %16 = vector.broadcast %c9_i32 : i32 to vector<10x32xi32>
    %17 = arith.cmpi eq, %9, %16 : vector<10x32xi32>
    %18 = vector.broadcast %11 : i1 to vector<10x32xi1>
    %19 = arith.andi %18, %17 : vector<10x32xi1>
    %20 = arith.ori %15, %19 : vector<10x32xi1>
    %cst_10 = arith.constant 0.000000e+00 : f32
    %21 = vector.broadcast %cst_10 : f32 to vector<10x32xf32>
    %22 = arith.select %20, %21, %8 : vector<10x32xi1>, vector<10x32xf32>
    %23 = vector.extract_strided_slice %22 {offsets = [0, 0], sizes = [5, 32], strides = [1, 1]} : vector<10x32xf32> to vector<5x32xf32>
    %24 = vector.extract_strided_slice %22 {offsets = [5, 0], sizes = [5, 32], strides = [1, 1]} : vector<10x32xf32> to vector<5x32xf32>
    %25 = vector.extract_strided_slice %23 {offsets = [0, 0], sizes = [4, 32], strides = [1, 1]} : vector<5x32xf32> to vector<4x32xf32>
    %26 = vector.extract_strided_slice %24 {offsets = [0, 0], sizes = [4, 32], strides = [1, 1]} : vector<5x32xf32> to vector<4x32xf32>
    %27 = vector.extract_strided_slice %23 {offsets = [1, 0], sizes = [4, 32], strides = [1, 1]} : vector<5x32xf32> to vector<4x32xf32>
    %28 = vector.extract_strided_slice %24 {offsets = [1, 0], sizes = [4, 32], strides = [1, 1]} : vector<5x32xf32> to vector<4x32xf32>
    %29 = tpu.concatenate %25, %26, %27, %28 in 1 : vector<4x32xf32>, vector<4x32xf32>, vector<4x32xf32>, vector<4x32xf32> -> vector<4x128xf32>
    %c0_11 = arith.constant 0 : index
    %c0_12 = arith.constant 0 : index
    %30 = vector.load %arg5[%c0_11, %c0_12] : memref<128x16xf32, #tpu.memory_space<vmem>>, vector<128x16xf32>
    %cst_13 = arith.constant dense<0.000000e+00> : vector<4x16xf32>
    %31 = tpu.matmul %29, %30, %cst_13 {dimension_numbers = #tpu.dot_dimension_numbers<[1], [0], [0], [1], [0, 0, 1, 1], [], []>} : vector<4x128xf32>, vector<128x16xf32>, vector<4x16xf32> -> vector<4x16xf32>
    %c0_14 = arith.constant 0 : index
    %c0_15 = arith.constant 0 : index
    %32 = vector.load %arg6[%c0_14, %c0_15] : memref<1x16xf32, #tpu.memory_space<vmem>>, vector<1x16xf32>
    %33 = vector.broadcast %32 : vector<1x16xf32> to vector<4x16xf32>
    %34 = arith.addf %31, %33 : vector<4x16xf32>
    %c0_16 = arith.constant 0 : index
    %c0_17 = arith.constant 0 : index
    %35 = vector.load %arg7[%c0_16, %c0_17] : memref<64x16xf32, #tpu.memory_space<vmem>>, vector<64x16xf32>
    %cst_18 = arith.constant dense<0.000000e+00> : vector<64x4xf32>
    %36 = tpu.matmul %35, %34, %cst_18 {dimension_numbers = #tpu.dot_dimension_numbers<[1], [1], [0], [0], [0, 0, 1, 0], [], []>} : vector<64x16xf32>, vector<4x16xf32>, vector<64x4xf32> -> vector<64x4xf32>
    %c0_19 = arith.constant 0 : index
    %c0_20 = arith.constant 0 : index
    %37 = vector.load %arg8[%c0_19, %c0_20] : memref<64x1xf32, #tpu.memory_space<vmem>>, vector<64x1xf32>
    %cst_21 = arith.constant 2.000000e+00 : f32
    %38 = vector.broadcast %cst_21 : f32 to vector<64x4xf32>
    %39 = arith.mulf %38, %36 : vector<64x4xf32>
    %40 = vector.broadcast %37 : vector<64x1xf32> to vector<64x4xf32>
    %41 = arith.subf %40, %39 : vector<64x4xf32>
    %42 = tpu.iota {dimensions = array<i32: 0>} : vector<64x4xi32>
    %cst_22 = arith.constant dense<0x7F800000> : vector<4xf32>
    %43 = vector.multi_reduction <minimumf>, %41, %cst_22 [0] : vector<64x4xf32> to vector<4xf32>
    %44 = vector.shape_cast %43 : vector<4xf32> to vector<1x4xf32>
    %45 = vector.broadcast %44 : vector<1x4xf32> to vector<64x4xf32>
    %46 = arith.cmpf oeq, %41, %45 : vector<64x4xf32>
    %c64_i32 = arith.constant 64 : i32
    %47 = vector.broadcast %c64_i32 : i32 to vector<64x4xi32>
    %48 = arith.select %46, %42, %47 : vector<64x4xi1>, vector<64x4xi32>
    %cst_23 = arith.constant dense<2147483647> : vector<4xi32>
    %49 = vector.multi_reduction <minsi>, %48, %cst_23 [0] : vector<64x4xi32> to vector<4xi32>
    %50 = vector.shape_cast %49 : vector<4xi32> to vector<1x4xi32>
    %c0_24 = arith.constant 0 : index
    %c0_25 = arith.constant 0 : index
    %c0_26 = arith.constant 0 : index
    %c0_27 = arith.constant 0 : index
    %51 = vector.load %arg9[%c0_24, %c0_25, %c0_26, %c0_27] : memref<1x1x1x4xi32, #tpu.memory_space<vmem>>, vector<1x1x1x4xi32>
    %52 = vector.shape_cast %51 : vector<1x1x1x4xi32> to vector<1x4xi32>
    %53 = vector.shape_cast %50 : vector<1x4xi32> to vector<1x1x1x4xi32>
    tpu.vector_store %arg9[%c0_24, %c0_25, %c0_26, %c0_27], %53 {strides = array<i32>} : memref<1x1x1x4xi32, #tpu.memory_space<vmem>>, vector<1x1x1x4xi32>,
    return
  }
  func.func @transform_0(%arg0: i32, %arg1: i32) -> (i32, i32, i32, i32) {
    %c0_i32 = arith.constant 0 : i32
    %c0_i32_0 = arith.constant 0 : i32
    %c0_i32_1 = arith.constant 0 : i32
    return %arg0, %arg1, %c0_i32, %c0_i32_0 : i32, i32, i32, i32
  }
  func.func @transform_1(%arg0: i32, %arg1: i32) -> (i32, i32) {
    %c0_i32 = arith.constant 0 : i32
    %c0_i32_0 = arith.constant 0 : i32
    %c0_i32_1 = arith.constant 0 : i32
    return %c0_i32, %c0_i32_0 : i32, i32
  }
  func.func @transform_2(%arg0: i32, %arg1: i32) -> (i32, i32) {
    %c0_i32 = arith.constant 0 : i32
    %c0_i32_0 = arith.constant 0 : i32
    %c0_i32_1 = arith.constant 0 : i32
    return %c0_i32, %c0_i32_0 : i32, i32
  }
  func.func @transform_3(%arg0: i32, %arg1: i32) -> (i32, i32) {
    %c0_i32 = arith.constant 0 : i32
    %c0_i32_0 = arith.constant 0 : i32
    %c0_i32_1 = arith.constant 0 : i32
    return %c0_i32, %c0_i32_0 : i32, i32
  }
  func.func @transform_4(%arg0: i32, %arg1: i32) -> (i32, i32) {
    %c0_i32 = arith.constant 0 : i32
    %c0_i32_0 = arith.constant 0 : i32
    %c0_i32_1 = arith.constant 0 : i32
    return %c0_i32, %c0_i32_0 : i32, i32
  }
  func.func @transform_5(%arg0: i32, %arg1: i32) -> (i32, i32) {
    %c0_i32 = arith.constant 0 : i32
    %c0_i32_0 = arith.constant 0 : i32
    %c0_i32_1 = arith.constant 0 : i32
    return %c0_i32, %c0_i32_0 : i32, i32
  }
  func.func @transform_6(%arg0: i32, %arg1: i32) -> (i32, i32) {
    %c0_i32 = arith.constant 0 : i32
    %c0_i32_0 = arith.constant 0 : i32
    %c0_i32_1 = arith.constant 0 : i32
    return %c0_i32, %c0_i32_0 : i32, i32
  }
  func.func @transform_7(%arg0: i32, %arg1: i32) -> (i32, i32, i32, i32) {
    %c0_i32 = arith.constant 0 : i32
    %c0_i32_0 = arith.constant 0 : i32
    %c0_i32_1 = arith.constant 0 : i32
    return %arg0, %arg1, %c0_i32, %c0_i32_0 : i32, i32, i32, i32
  }
}

</mosaic_0001>

<bundles_post_ra>
// kernel: tpu_custom_call.1
= control target key start
LH: loop header
LB: loop body
LE: loop exit
PB: predicated region body
PF: predicated region fallthrough
CT: control target
= control target key end

     0   :  { %12 = vsyncpa [#allocation3], 0  ;;  %s1498_s0 = inlined_call_operand.vmem [shape: f32[2,1,10,16], index: 0, kind: input, shape index: {}]   ;;  %s1499_s1 = inlined_call_operand.vmem [shape: f32[16,32], index: 1, kind: input, shape index: {}]   ;;  %s1500_s2 = inlined_call_operand.vmem [shape: f32[1,32], index: 2, kind: input, shape index: {}]   ;;  %s1501_s3 = inlined_call_operand.vmem [shape: f32[128,16], index: 3, kind: input, shape index: {}]   ;;  %s1502_s4 = inlined_call_operand.vmem [shape: f32[1,16], index: 4, kind: input, shape index: {}]   ;;  %s1503_s5 = inlined_call_operand.vmem [shape: f32[64,16], index: 5, kind: input, shape index: {}]   ;;  %s1504_s6 = inlined_call_operand.vmem [shape: f32[64,1], index: 6, kind: input, shape index: {}]   ;;  %s1505_s7 = inlined_call_operand.hbm [shape: s32[2,1,1,4], index: 7, kind: output, shape index: {}]  }
   0x1   :  { %14 = vsyncpa [#allocation3 + $0x1], 0  ;;  %s1235_s24 = smov 0   ;;  %s1237_s25 = smov 0  }
   0x2   :  { %s1239_s26 = smov 0   ;;  %s1241_s27 = smov 0  }
   0x3   :  { %s1243_s28 = smov 0   ;;  %s1245_s29 = smov 0  }
   0x4 LB: > { %s905_s30 = sadd.s32 4294967295, %s1185_s29   ;;  %s906_s8 = sadd.s32 4294967294, %s1185_s29   ;;  %s1185_s29 = sphi %s1245_s29, %s20_s29   ;;  %s1181_s28 = sphi %s1243_s28, %s1512_s28   ;;  %s1177_s27 = sphi %s1241_s27, %s1511_s27   ;;  %s1173_s26 = sphi %s1239_s26, %s1510_s26   ;;  %s1169_s25 = sphi %s1237_s25, %s1509_s25   ;;  %s1165_s24 = sphi %s1235_s24, %s1508_s24  }
   0x5   : > { %s32_s9 = sadd.s32 1, %s1181_s28  ;;  %s195_s10 = sadd.s32 1, %s1173_s26 }
   0x6   : > { %p34_p0 = scmp.ge.s32.totalorder %s32_s9, 2  ;;  %p205_p1 = scmp.ne.s32.totalorder %s1173_s26, %s1169_s25 }
   0x7   : > { %p206_p2 = scmp.eq.s32.totalorder %s905_s30, 1  ;;  %p211_p3 = scmp.ne.s32.totalorder %s1169_s25, %s1165_s24 }
   0x8   : > { %s1514_s9 = smov (%p34_p0, %s32_s9), 0  ;;  %p212_p5 = scmp.eq.s32.totalorder %s906_s8, 1 }
   0x9   : > { %p1275_p4 = por %p206_p2, %p205_p1  ;;  %s190_s12 = ssub.s32 %s1181_s28, %s1514_s9 }
   0xa   : > { %p909_p6 = scmp.ge.s32.totalorder %s1185_s29, 1  ;;  %p193_p7 = scmp.eq.s32.totalorder %s190_s12, 0 }
   0xb   : > { %p1282_p8 = por %p212_p5, %p211_p3  ;;  %p260_p9 = scmp.lt.s32.totalorder %s1185_s29, 3 }
   0xc   : > { %s1288_s14 = scalar_select %p193_p7, %s1173_s26, %s195_s10  }
   0xd   : > { %p261_p10 = pnand %p909_p6, %p260_p9 }
   0xe   : > { %v306_v0 = vld [vmem:[%s1499_s1] sm:$0xff] (!%p261_p10)  ;;  %v307_v1 = vld [vmem:[%s1499_s1 + $0x8] sm:$0xff] (!%p261_p10)  ;;  %p295_p11 = scmp.lt.s32.totalorder (!%p261_p10), %s1177_s27, 1  ;;  %vm315_vm0 = vcmask (!%p261_p10), 130048   ;;  %v446_v7 = vld [vmem:[%s1501_s3 + $0x10] sm:$0xff] (!%p261_p10)  ;;  %v1187_v8 = vmov (!%p261_p10), 0.0|0.0   ;;  %v399_v27 = vlaneseq (!%p261_p10) }
   0xf   : > { %264 = sbr.rel (%p261_p10) target bundleno = 875 (0x36b), region = 48  ;;  %v1015_v2 = vpack.c.bf16 (!%p261_p10), %v307_v1, %v306_v0  ;;  %v444_v5 = vld [vmem:[%s1501_s3] sm:$0xff] (!%p261_p10)  ;;  %v445_v6 = vld [vmem:[%s1501_s3 + $0x8] sm:$0xff] (!%p261_p10)  ;;  %1019 = vmatprep.subr.bf16.mxu1 (!%p261_p10), %v1187_v8  ;;  %v447_v10 = vld [vmem:[%s1501_s3 + $0x18] sm:$0xff] (!%p261_p10)  ;;  %vm1188_vm2 = vmmov (!%p261_p10), 0   ;;  %v1189_v38 = vmov (!%p261_p10), 0.0  }
  0x10   : > { %v1020_v9 = vpack.c.bf16 (!%p261_p10), %v445_v6, %v444_v5  ;;  %v1023_v11 = vpack.c.bf16 (!%p261_p10), %v447_v10, %v446_v7  ;;  %v448_v12 = vld [vmem:[%s1501_s3 + $0x20] sm:$0xff] (!%p261_p10)  ;;  %v449_v13 = vld [vmem:[%s1501_s3 + $0x28] sm:$0xff] (!%p261_p10)  ;;  %v450_v15 = vld [vmem:[%s1501_s3 + $0x30] sm:$0xff] (!%p261_p10)  ;;  %v1345_v28 = vshrl.u32 (!%p261_p10), %v399_v27, 7  ;;  %998 = vmatprep.mubr.msk.f32.mxu1 (!%p261_p10), %vm1188_vm2, %v1189_v38  ;;  %vm431_vm4 = vcmask (!%p261_p10), 1041408   ;;  %s1192_s21 = smov (!%p261_p10), 64  }
  0x11   : > { %1016 = vmatprep.subr.bf16.mxu0 (!%p261_p10), %v1015_v2  ;;  %v1026_v14 = vpack.c.bf16 (!%p261_p10), %v449_v13, %v448_v12  ;;  %v451_v16 = vld [vmem:[%s1501_s3 + $0x38] sm:$0xff] (!%p261_p10)  ;;  %v452_v18 = vld [vmem:[%s1501_s3 + $0x40] sm:$0xff] (!%p261_p10)  ;;  %v453_v19 = vld [vmem:[%s1501_s3 + $0x48] sm:$0xff] (!%p261_p10)  ;;  %vm420_vm5 = vcmask (!%p261_p10), 1042432   ;;  %vm438_vm6 = vcmask (!%p261_p10), 261120   ;;  %vm440_vm7 = vcmask (!%p261_p10), 523264  }
  0x12   : > { %1018 = vmatpush3.bf16.msra.mxu0 (!%p261_p10), %v1015_v2  ;;  %1021 = vmatpush3.bf16.msra.mxu1 (!%p261_p10), %v1020_v9  ;;  %v1029_v17 = vpack.c.bf16 (!%p261_p10), %v451_v16, %v450_v15  ;;  %v1032_v20 = vpack.c.bf16 (!%p261_p10), %v453_v19, %v452_v18  ;;  %v454_v21 = vld [vmem:[%s1501_s3 + $0x50] sm:$0xff] (!%p261_p10)  ;;  %v455_v22 = vld [vmem:[%s1501_s3 + $0x58] sm:$0xff] (!%p261_p10)  ;;  %v456_v24 = vld [vmem:[%s1501_s3 + $0x60] sm:$0xff] (!%p261_p10)  ;;  %v1357_v32 = vadd.s32 (!%p261_p10), 8, %v1345_v28  ;;  %vm403_vm3 = vcmp.eq.s32.totalorder (!%p261_p10), %v1345_v28, 0  ;;  %s293_s17 = sand.u32 (!%p261_p10), 1, %s1169_s25  }
  0x13   : > { %1022 = vmatprep.subr.bf16.mxu1 (!%p261_p10), %v1187_v8  ;;  %v1035_v23 = vpack.c.bf16 (!%p261_p10), %v455_v22, %v454_v21  ;;  %v457_v25 = vld [vmem:[%s1501_s3 + $0x68] sm:$0xff] (!%p261_p10)  ;;  %v458_v29 = vld [vmem:[%s1501_s3 + $0x70] sm:$0xff] (!%p261_p10)  ;;  %v459_v30 = vld [vmem:[%s1501_s3 + $0x78] sm:$0xff] (!%p261_p10)  ;;  %vm442_vm8 = vcmask (!%p261_p10), 785408   ;;  %v1193_v58 = vmov (!%p261_p10), 0   ;;  %vm747_vm9 = vcmask (!%p261_p10), 31744  }
  0x14   : > { %v1038_v26 = vpack.c.bf16 (!%p261_p10), %v457_v25, %v456_v24  ;;  %v912_v31 = vld [vmem:[%s1500_s2] ss:$0 sm:$0xff] (!%p261_p10)  ;;  %v1041_v33 = vpack.c.bf16 (!%p261_p10), %v459_v30, %v458_v29  ;;  %vm411_vm1 = vcmp.eq.s32.totalorder (!%p261_p10), %v1357_v32, 9  ;;  %1105 = vset.pattern.permute.xlu1 (!%p261_p10), %v1193_v58  ;;  %1106 = vset.pattern.permute.xlu0 (!%p261_p10), %v1193_v58  ;;  %v678_v59 = vld [vmem:[%s1504_s6 + $0x8] sm:$0xff] (!%p261_p10)  ;;  %v679_v60 = vld [vmem:[%s1504_s6 + $0x10] sm:$0xff] (!%p261_p10)  ;;  %s925_s18 = sshll.u32 (!%p261_p10), %s1177_s27, 4 }
  0x15   : > { %v537_v56 = vld [vmem:[%s1503_s5] sm:$0xff] (!%p261_p10)  ;;  %v680_v62 = vld [vmem:[%s1504_s6 + $0x18] sm:$0xff] (!%p261_p10)  ;;  %v683_v63 = vld [vmem:[%s1504_s6 + $0x30] sm:$0xff] (!%p261_p10)  ;;  %s819_s30 = scalar_lea.sflag (!%p261_p10), [#allocation3], %s293_s17 }
  0x16   : > { %s296_s19 = scalar_select %p295_p11, %s1177_s27, 1  ;;  %1024 = vmatpush3.bf16.msra.mxu1 %v1023_v11  ;;  %v677_v57 = vld [vmem:[%s1504_s6] sm:$0xff]  ;;  %v682_v0 = vld [vmem:[%s1504_s6 + $0x28] sm:$0xff]  ;;  %v684_v1 = vld [vmem:[%s1504_s6 + $0x38] sm:$0xff] }
  0x17   : > { %1025 = vmatprep.subr.bf16.mxu1 %v1187_v8  ;;  %v681_v61 = vld [vmem:[%s1504_s6 + $0x20] sm:$0xff]  ;;  %v538_v6 = vld [vmem:[%s1503_s5 + $0x8] sm:$0xff]  ;;  %v539_v7 = vld [vmem:[%s1503_s5 + $0x10] sm:$0xff]  ;;  %s1194_s27 = smov [#allocation2]  }
  0x18   : > { %s928_s20 = sshll.u32 %s296_s19, 4  ;;  %s1190_s19 = smov 96   ;;  %v915_v2 = vld [vmem:[%s1502_s4] ss:$0 sm:$0xff]  ;;  %v542_v10 = vld [vmem:[%s1503_s5 + $0x28] sm:$0xff]  ;;  %v543_v11 = vld [vmem:[%s1503_s5 + $0x30] sm:$0xff] }
  0x19   : > { %s303_s23 = scalar_lea.vmem %s1498_s0, %s928_s20  ;;  %s1191_s20 = smov 32   ;;  %v541_v9 = vld [vmem:[%s1503_s5 + $0x20] sm:$0xff]  ;;  %v544_v12 = vld [vmem:[%s1503_s5 + $0x38] sm:$0xff] }
  0x1a   : > { %v304_v3 = vld [vmem:[%s303_s23] sm:$0xff]  ;;  %v305_v4 = vld [vmem:[%s303_s23 + $0x8] sm:$0x3]  ;;  %1027 = vmatpush3.bf16.msra.mxu1 %v1026_v14  ;;  %s1451_s23 = scalar_lea.hbm %s1505_s7, %s925_s18  ;;  %s1111_s10 = sshll.u32 %s1194_s27, 4  ;;  %s1112_s10 = int_to_ptr.vmem [resolvable:$false] %s1111_s10 }
  0x1b   : > { %963 = vmatprep.mubr.msk.f32.mxu0 %vm315_vm0, %v304_v3  ;;  %1028 = vmatprep.subr.bf16.mxu1 %v1187_v8  ;;  %s1113_s12 = scalar_lea.vmem %s1112_s10, 32 }
  0x1c   : > { %964 = vmatmul.mubr.msk.f32.vlgmr.msra.gmra.mrb[0].mxu0 %vm315_vm0, %v305_v4 }
  0x1d   : > { %1003 = vmatprep.mubr.msk.f32.mxu0 %vm315_vm0, %v537_v56 }
  0x1e   : > { %1030 = vmatpush3.bf16.msra.mxu1 %v1029_v17 }
  0x1f   : > { %1031 = vmatprep.subr.bf16.mxu1 %v1187_v8 }
  0x22   : > { %1033 = vmatpush3.bf16.msra.mxu1 %v1032_v20 }
  0x23   : > { %1034 = vmatprep.subr.bf16.mxu1 %v1187_v8 }
  0x26   : > { %1036 = vmatpush3.bf16.msra.mxu1 %v1035_v23 }
  0x27   : > { %1037 = vmatprep.subr.bf16.mxu1 %v1187_v8 }
  0x2a   : > { %1039 = vmatpush3.bf16.msra.mxu1 %v1038_v26 }
  0x2b   : > { %1040 = vmatprep.subr.bf16.mxu1 %v1187_v8  ;;  %v540_v8 = vld [vmem:[%s1503_s5 + $0x18] sm:$0xff] }
  0x2e   : > { %1042 = vmatpush3.bf16.msra.mxu1 %v1041_v33 }
  0xef   : > { %v965_v34 = vpop.f32.mrb[0].mxu0 }
  0xf0   : > { %v394_v35 = vadd.f32 %v965_v34, %v912_v31  ;;  %v388_v36 = vpop.f32.mrb[1].mxu0 }
  0xf1   : > { %v389_v37 = vadd.f32 %v912_v31, %v388_v36 }
  0xf2   : > { %v398_v39 = vmax.f32 %v394_v35, 0.0 }
  0xf3   : > { %v397_v40 = vmax.f32 %v389_v37, 0.0 }
  0xf4   : > { %v417_v41 = vsel %vm411_vm1, 0.0, %v398_v39 }
  0xf5   : > { %v422_v42 = vrot.slane %v417_v41, 5  ;;  %v433_v43 = vrot.slane %v417_v41, 6  ;;  %v416_v44 = vsel %vm403_vm3, 0.0, %v397_v40 }
  0xf6   : > { %v432_v45 = vrot.slane %v416_v44, 6  ;;  %v421_v46 = vrot.slane %v416_v44, 5  ;;  %v427_v49 = vrot.slane %v416_v44, 1 }
  0xf8   : > { %v434_v47 = vsel %vm431_vm4, %v432_v45, %v433_v43  ;;  %v423_v48 = vsel %vm420_vm5, %v421_v46, %v422_v42 }
  0xf9   : > { %435 = vrot.lane.b32.xlu1 %v434_v47, %s1190_s19  ;;  %424 = vrot.lane.b32.xlu0 %v423_v48, %s1191_s20  ;;  %s294_s19 = scalar_lea.vmem [#allocation2], %s293_s17 }
  0xfa   : > { %s832_s20 = sshll.u32 %s294_s19, 4  ;;  %s1453_s20 = int_to_ptr.vmem [resolvable:$true] %s832_s20 }
  0xfb   : > { %s1107_s8 = scalar_lea.vmem %s1453_s20, 16  ;;  %p1114_p1 = scmp.lt.s32.totalorder %s1453_s20, %s1112_s10 }
  0xfc   : > { %p1108_p12 = scmp.ne.s32.totalorder %s1453_s20, %s1107_s8  ;;  %p1115_p2 = scmp.lt.s32.totalorder %s1113_s12, %s1107_s8 }
  0xfd   : > { %428 = vrot.lane.b32.xlu0 %v427_v49, %s1192_s21  ;;  %695 = vperm.xlu1 %1105, %v677_v57  }
  0xfe   : > { %p1109_p13 = pnand %p1108_p12, %p1275_p4  ;;  %p1116_p3 = por %p1115_p2, %p1114_p1 }
 0x100   : > { %p1110_p0 = pneg %p1109_p13 }
 0x101   : > { %700 = vperm.xlu0 %1106, %v678_v59   ;;  %705 = vperm.xlu1 %1105, %v679_v60  }
 0x102   : > { %p1117_p5 = pnand %p1116_p3, %p1110_p0 }
 0x105   : > { %715 = vperm.xlu0 %1106, %v681_v61   ;;  %710 = vperm.xlu1 %1105, %v680_v62  }
 0x109   : > { %725 = vperm.xlu0 %1106, %v683_v63   ;;  %720 = vperm.xlu1 %1105, %v682_v0  }
 0x10d   : > { %730 = vperm.xlu1 %1105, %v684_v1  }
 0x16b   : > { %v425_v50 = vpop.permute.xlu0 %424  ;;  %v436_v53 = vpop.permute.xlu1 %435 }
 0x16c   : > { %v439_v51 = vsel %vm438_vm6, %v416_v44, %v425_v50 }
 0x16f   : > { %v429_v52 = vpop.permute.xlu0 %428 }
 0x170   : > { %v441_v54 = vsel %vm440_vm7, %v439_v51, %v429_v52 }
 0x171   : > { %v443_v55 = vsel %vm442_vm8, %v441_v54, %v436_v53 }
 0x172   : > { %999 = vmatmul.mubr.f32.vlgmr.msra.gmra.mrb[0].mxu1 %v443_v55 }
 0x17c   : > { %v696_v13 = vpop.permute.xlu1 %695 }
 0x180   : > { %v706_v14 = vpop.permute.xlu1 %705  ;;  %v701_v18 = vpop.permute.xlu0 %700 }
 0x184   : > { %v711_v17 = vpop.permute.xlu1 %710  ;;  %v716_v29 = vpop.permute.xlu0 %715 }
 0x188   : > { %v721_v23 = vpop.permute.xlu1 %720  ;;  %v726_v49 = vpop.permute.xlu0 %725 }
 0x18c   : > { %v731_v44 = vpop.permute.xlu1 %730 }
 0x245   : > { %v533_v3 = vpop.f32.mrb[0].mxu1 }
 0x246   : > { %v534_v4 = vadd.f32 %v915_v2, %v533_v3  ;;  %v1000_v5 = vpop.f32.mrb[1].mxu1  ;;  %v741_v3 = vadd.s32 16, %v1345_v28 }
 0x248   : > { %1001 = vmatprep.subr.msk.mxu0 %vm315_vm0, %v534_v4 }
 0x249   : > { %1002 = vmatpush3.xpose.msk.msra.mxu0 %vm315_vm0, %v534_v4  ;;  %v742_v4 = vadd.s32 24, %v1345_v28 }
 0x24c   : > { %1004 = vmatmul.mubr.msk.f32.vlgmr.msra.gmra.mrb[2].mxu0 %vm315_vm0, %v538_v6  ;;  %v743_v6 = vadd.s32 32, %v1345_v28 }
 0x24d   : > { %1006 = vmatprep.mubr.msk.f32.mxu0 %vm315_vm0, %v539_v7  ;;  %v744_v7 = vadd.s32 40, %v1345_v28 }
 0x250   : > { %1007 = vmatmul.mubr.msk.f32.gmra.mrb[4].mxu0 %vm315_vm0, %v540_v8  ;;  %v745_v8 = vadd.s32 48, %v1345_v28 }
 0x251   : > { %1009 = vmatprep.mubr.msk.f32.mxu0 %vm315_vm0, %v541_v9  ;;  %v746_v9 = vadd.s32 56, %v1345_v28 }
 0x254   : > { %1010 = vmatmul.mubr.msk.f32.gmra.mrb[6].mxu0 %vm315_vm0, %v542_v10 }
 0x255   : > { %1012 = vmatprep.mubr.msk.f32.mxu0 %vm315_vm0, %v543_v11 }
 0x258   : > { %1013 = vmatmul.mubr.msk.f32.gmra.mrb[8].mxu0 %vm315_vm0, %v544_v12 }
 0x31f   : > { %v1005_v15 = vpop.f32.mrb[2].mxu0 }
 0x320   : > { %v638_v16 = vpop.f32.mrb[3].mxu0  ;;  %v686_v19 = vmul.f32 2.0, %v1005_v15 }
 0x321   : > { %v685_v21 = vmul.f32 2.0, %v638_v16 }
 0x322   : > { %v734_v24 = vsub.f32 %v701_v18, %v686_v19 }
 0x323   : > { %v1008_v20 = vpop.f32.mrb[4].mxu0  ;;  %v733_v26 = vsub.f32 %v696_v13, %v685_v21 }
 0x324   : > { %v648_v22 = vpop.f32.mrb[5].mxu0  ;;  %v688_v27 = vmul.f32 2.0, %v1008_v20  ;;  %v749_v36 = vsel %vm747_vm9, %v734_v24, inf }
 0x325   : > { %v687_v33 = vmul.f32 2.0, %v648_v22  ;;  %v748_v39 = vsel %vm747_vm9, %v733_v26, inf }
 0x326   : > { %v736_v40 = vsub.f32 %v711_v17, %v688_v27 }
 0x327   : > { %v1011_v25 = vpop.f32.mrb[6].mxu0  ;;  %v735_v45 = vsub.f32 %v706_v14, %v687_v33 }
 0x328   : > { %v690_v30 = vmul.f32 2.0, %v1011_v25  ;;  %v658_v31 = vpop.f32.mrb[7].mxu0  ;;  %v751_v53 = vsel %vm747_vm9, %v736_v40, inf }
 0x329   : > { %v689_v34 = vmul.f32 2.0, %v658_v31  ;;  %v750_v56 = vsel %vm747_vm9, %v735_v45, inf }
 0x32a   : > { %v738_v35 = vsub.f32 %v721_v23, %v690_v30 }
 0x32b   : > { %v737_v37 = vsub.f32 %v716_v29, %v689_v34  ;;  %v1014_v38 = vpop.f32.mrb[8].mxu0 }
 0x32c   : > { %v754_v41 = vsel %vm747_vm9, %v738_v35, inf  ;;  %v692_v42 = vmul.f32 2.0, %v1014_v38  ;;  %v668_v43 = vpop.f32.mrb[9].mxu0 }
 0x32d   : > { %v755_v46 = vmin.f32 %v749_v36, %v754_v41  ;;  %v752_v47 = vsel %vm747_vm9, %v737_v37, inf  ;;  %v691_v48 = vmul.f32 2.0, %v668_v43 }
 0x32e   : > { %v753_v50 = vmin.f32 %v748_v39, %v752_v47  ;;  %v740_v51 = vsub.f32 %v731_v44, %v692_v42 }
 0x32f   : > { %v739_v52 = vsub.f32 %v726_v49, %v691_v48 }
 0x330   : > { %v760_v54 = vmin.f32 %v753_v50, %v755_v46  ;;  %v758_v55 = vsel %vm747_vm9, %v740_v51, inf }
 0x331   : > { %v759_v57 = vmin.f32 %v751_v53, %v758_v55  ;;  %v756_v58 = vsel %vm747_vm9, %v739_v52, inf }
 0x332   : > { %v757_v59 = vmin.f32 %v750_v56, %v756_v58 }
 0x334   : > { %v761_v60 = vmin.f32 %v757_v59, %v759_v57 }
 0x336   : > { %v762_v61 = vmin.f32 %v760_v54, %v761_v60 }
 0x338   : > { %v763_v62 = vrot.slane %v762_v61, 4 }
 0x33a   : > { %v764_v63 = vmin.f32 %v762_v61, %v763_v62 }
 0x33c   : > { %v765_v0 = vrot.slane %v764_v63, 2 }
 0x33e   : > { %v766_v1 = vmin.f32 %v764_v63, %v765_v0 }
 0x340   : > { %v767_v2 = vrot.slane %v766_v1, 1 }
 0x342   : > { %v768_v5 = vmin.f32 %v766_v1, %v767_v2 }
 0x344   : > { %vm769_vm10 = vcmp.eq.f32.partialorder %v733_v26, %v768_v5  ;;  %vm770_vm11 = vcmp.eq.f32.partialorder %v734_v24, %v768_v5  ;;  %vm771_vm12 = vcmp.eq.f32.partialorder %v735_v45, %v768_v5  ;;  %vm772_vm13 = vcmp.eq.f32.partialorder %v736_v40, %v768_v5 }
 0x345   : > { %vm773_vm14 = vcmp.eq.f32.partialorder %v737_v37, %v768_v5  ;;  %vm774_vm15 = vcmp.eq.f32.partialorder %v738_v35, %v768_v5  ;;  %vm775_vm0 = vcmp.eq.f32.partialorder %v739_v52, %v768_v5  ;;  %vm776_vm1 = vcmp.eq.f32.partialorder %v740_v51, %v768_v5 }
 0x346   : > { %v777_v10 = vsel %vm769_vm10, %v1345_v28, 64  ;;  %v778_v11 = vsel %vm770_vm11, %v1357_v32, 64  ;;  %v779_v12 = vsel %vm771_vm12, %v741_v3, 64  ;;  %v780_v13 = vsel %vm772_vm13, %v742_v4, 64 }
 0x347   : > { %v781_v14 = vsel %vm773_vm14, %v743_v6, 64  ;;  %v782_v15 = vsel %vm774_vm15, %v744_v7, 64  ;;  %v783_v16 = vsel %vm775_vm0, %v745_v8, 64  ;;  %v784_v17 = vsel %vm776_vm1, %v746_v9, 64 }
 0x348   : > { %v785_v18 = vsel %vm747_vm9, %v777_v10, 2147483647  ;;  %v786_v19 = vsel %vm747_vm9, %v778_v11, 2147483647  ;;  %v787_v20 = vsel %vm747_vm9, %v779_v12, 2147483647 }
 0x349   : > { %v788_v21 = vsel %vm747_vm9, %v780_v13, 2147483647  ;;  %v789_v22 = vsel %vm747_vm9, %v781_v14, 2147483647  ;;  %v792_v28 = vsel %vm747_vm9, %v782_v15, 2147483647 }
 0x34a   : > { %vm790_vm2 = vcmp.lt.s32.totalorder %v785_v18, %v789_v22  ;;  %vm793_vm3 = vcmp.lt.s32.totalorder %v786_v19, %v792_v28  ;;  %v795_v32 = vsel %vm747_vm9, %v783_v16, 2147483647  ;;  %v798_v23 = vsel %vm747_vm9, %v784_v17, 2147483647 }
 0x34b   : > { %v791_v24 = vsel %vm790_vm2, %v785_v18, %v789_v22  ;;  %v794_v25 = vsel %vm793_vm3, %v786_v19, %v792_v28  ;;  %vm796_vm4 = vcmp.lt.s32.totalorder %v787_v20, %v795_v32  ;;  %vm799_vm5 = vcmp.lt.s32.totalorder %v788_v21, %v798_v23 }
 0x34c   : > { %v797_v26 = vsel %vm796_vm4, %v787_v20, %v795_v32  ;;  %v800_v27 = vsel %vm799_vm5, %v788_v21, %v798_v23  ;;  %vm801_vm6 = vcmp.lt.s32.totalorder %v791_v24, %v794_v25  ;;  %vm816_vm11 = vcmask 24576  }
 0x34d   : > { %v802_v29 = vsel %vm801_vm6, %v791_v24, %v794_v25  ;;  %vm803_vm7 = vcmp.lt.s32.totalorder %v797_v26, %v800_v27 }
 0x34e   : > { %v804_v30 = vsel %vm803_vm7, %v797_v26, %v800_v27 }
 0x34f   : > { %vm805_vm8 = vcmp.lt.s32.totalorder %v802_v29, %v804_v30 }
 0x350   : > { %v806_v31 = vsel %vm805_vm8, %v802_v29, %v804_v30 }
 0x351   : > { %v807_v33 = vrot.slane %v806_v31, 4 }
 0x353   : > { %vm808_vm10 = vcmp.lt.s32.totalorder %v806_v31, %v807_v33 }
 0x354   : > { %v809_v34 = vsel %vm808_vm10, %v806_v31, %v807_v33 }
 0x355   : > { %v810_v35 = vrot.slane %v809_v34, 2 }
 0x357   : > { %vm811_vm9 = vcmp.lt.s32.totalorder %v809_v34, %v810_v35 }
 0x358   : > { %v812_v36 = vsel %vm811_vm9, %v809_v34, %v810_v35 }
 0x359   : > { %v813_v37 = vrot.slane %v812_v36, 1 }
 0x35b   : > { %vm814_vm12 = vcmp.lt.s32.totalorder %v812_v36, %v813_v37 }
 0x35c   : > { %v815_v38 = vsel %vm814_vm12, %v812_v36, %v813_v37 }
 0x35d   : > { %817 = vst.msk [vmem:[%s294_s19] sm:$0x1] %vm816_vm11, %v815_v38 }
 0x35e   : > { %1120 = shalt.err (!%p1117_p5)
}
 0x35f   : > { %s1121_s15 = scalar_lea.hbm %s1451_s23, 16  ;;  %s1125_s18 = scalar_lea.hbm %s1505_s7, 32 }
 0x360   : > { %p1122_p6 = scmp.ne.s32.totalorder %s1451_s23, %s1121_s15  ;;  %p1126_p10 = scmp.lt.u32.totalorder %s1451_s23, %s1505_s7 }
 0x361   : > { %p1127_p11 = scmp.lt.u32.totalorder %s1125_s18, %s1121_s15  ;;  %p1129_p13 = scmp.lt.u32.totalorder %s1121_s15, %s1451_s23 }
 0x362   : > { %p1123_p7 = pnand %p1122_p6, %p1275_p4 }
 0x363   : > { %p1128_p12 = por %p1127_p11, %p1126_p10 }
 0x364   : > { %p1124_p9 = pneg %p1123_p7 }
 0x365   : > { %p1130_p0 = por %p1129_p13, %p1128_p12 }
 0x367   : > { %p1131_p1 = pnand %p1130_p0, %p1124_p9 }
 0x369   : > { %1134 = shalt.err (!%p1131_p1)
}
 0x36a   : > { %1043 = dma.vmem_to_hbm [thread:$0]  (%p1275_p4), %s1453_s20, 16, %s1451_s23, %s819_s30  }
 0x36b PF: > { %p1049_p2 = scmp.ge.s32.totalorder %s1185_s29, 2  ;;  %s844_s22 = sand.u32 1, %s1165_s24  }
 0x36c   : > { %s845_s8 = scalar_lea.sflag [#allocation3], %s844_s22 }
 0x36d   : > { %p1046_p3 = pnand %p1049_p2, %p1282_p8 }
 0x36f   : > { %1160 = dma.done.wait (!%p1046_p3), %s845_s8, 16  }
 0x370   : > { %1162 = vsyncadd (!%p1046_p3), %s845_s8, 4294967280  ;;  %s20_s29 = sadd.s32 1, %s1185_s29   ;;  %s1508_s24 = smov %s1169_s25 }
 0x371   : > { %p17_p5 = scmp.ge.s32.totalorder %s20_s29, 4   ;;  %s1509_s25 = smov %s1173_s26 }
 0x372   : > { %s1510_s26 = smov %s1288_s14  ;;  %s1511_s27 = smov %s1181_s28 }
 0x373   : > { %s1512_s28 = smov %s1514_s9  ;;  %19 = sbr.rel (!%p17_p5) target bundleno = 4 (0x4), region = 83 }
 0x37a   :  { %849 = vsyncpa [#allocation3], 1 }
 0x37b   :  { %851 = vsyncpa [#allocation3 + $0x1], 1 }

</bundles_post_ra>
